<compile_context>
chip_gen: v7x
topology: tpu7x:2x2x1
jax: 0.10.0
libtpu: 0.0.40
codegen_flags: <defaults>
</compile_context>

<pallas_src>
import functools

import jax
import jax.numpy as jnp
from jax import lax
from jax.experimental import pallas as pl
from jax.experimental.pallas import tpu as pltpu


def _gather_target_logit(x, t, col_offset):
    """Sum-gather the target-class logit from a (bn, bc) tile.

    VPU-only (iota + compare + select); exact because at most one column per row
    matches. Runs in the input dtype, upcast only on the per-row result.
    """
    cols = col_offset + lax.broadcasted_iota(jnp.int32, x.shape, 1)
    hit = jnp.where(cols == t, x, jnp.zeros_like(x))
    return jnp.sum(hit, axis=-1, keepdims=True).astype(jnp.float32), cols


def _ce_kernel_single(logits_ref, targets_ref, out_ref, *, n_rows, block_n, mask_rows):
    """Single pass over the full class dim (C fits in one block)."""
    i = pl.program_id(0)

    x = logits_ref[...]                      # (block_n, C) in the input dtype
    t = targets_ref[...]                     # (block_n, 1) int32

    # Row max in the native dtype; upcast only inside the exp (no retained f32 copy).
    m = jnp.max(x, axis=-1, keepdims=True).astype(jnp.float32)        # (bn, 1)
    p = jnp.exp(x.astype(jnp.float32) - m)                            # f32 transient
    lse = jnp.log(jnp.sum(p, axis=-1, keepdims=True)) + m             # (bn, 1)

    tgt, _ = _gather_target_logit(x, t, 0)
    per_row = lse - tgt                                               # (bn, 1) f32

    if mask_rows:  # rows past N in the last partial block
        row_ids = i * block_n + lax.broadcasted_iota(jnp.int32, per_row.shape, 0)
        per_row = jnp.where(row_ids < n_rows, per_row, 0.0)

    out_ref[...] = jnp.broadcast_to(jnp.sum(per_row), out_ref.shape)


def _ce_kernel_tiled(logits_ref, targets_ref, out_ref, m_sc, l_sc, tg_sc, *,
                     n_rows, n_cols, block_n, block_c, mask_rows, mask_cols):
    """Online (running max / running sum) LSE over class tiles for huge C."""
    i = pl.program_id(0)
    j = pl.program_id(1)

    @pl.when(j == 0)
    def _():
        m_sc[...] = jnp.full_like(m_sc, -jnp.inf)
        l_sc[...] = jnp.zeros_like(l_sc)
        tg_sc[...] = jnp.zeros_like(tg_sc)

    x = logits_ref[...]                      # (block_n, block_c) input dtype
    t = targets_ref[...]                     # (block_n, 1) int32

    tgt_part, cols = _gather_target_logit(x, t, j * block_c)
    tg_sc[...] += tgt_part

    if mask_cols:  # last partial class block: padded lanes are undefined
        col_ok = cols < n_cols
        x_for_max = jnp.where(col_ok, x, jnp.full_like(x, -jnp.inf))
    else:
        x_for_max = x

    tile_max = jnp.max(x_for_max, axis=-1, keepdims=True).astype(jnp.float32)
    m_prev = m_sc[...]
    m_new = jnp.maximum(m_prev, tile_max)

    p = jnp.exp(x.astype(jnp.float32) - m_new)                        # f32 transient
    if mask_cols:
        p = jnp.where(col_ok, p, 0.0)
    alpha = jnp.exp(m_prev - m_new)                                   # (bn, 1) f32
    l_sc[...] = alpha * l_sc[...] + jnp.sum(p, axis=-1, keepdims=True)
    m_sc[...] = m_new

    @pl.when(j == pl.num_programs(1) - 1)
    def _():
        per_row = jnp.log(l_sc[...]) + m_sc[...] - tg_sc[...]         # (bn, 1) f32
        if mask_rows:
            row_ids = i * block_n + lax.broadcasted_iota(jnp.int32, per_row.shape, 0)
            per_row = jnp.where(row_ids < n_rows, per_row, 0.0)
        out_ref[...] = jnp.broadcast_to(jnp.sum(per_row), out_ref.shape)


_TARGET_BLOCK_BYTES = 4 << 20       # ~4 MiB of logits per grid step (HBM-roofline sized)
_MAX_BLOCK_N = 2048                 # keeps the lane-padded (bn, 1) tiles / scratch small
_CLASS_TILE_ROW_BYTES = 128 << 10   # tile classes when one row of logits >= 128 KiB


def _choose_blocks(n, c, itemsize, block_n, block_c):
    if block_c is None:
        if c * itemsize >= _CLASS_TILE_ROW_BYTES and c > 128:
            # Class tiling: keep block_n ~256 and ~4 MiB per tile.
            bc = (_TARGET_BLOCK_BYTES // (256 * itemsize)) // 128 * 128
            block_c = int(max(128, min(bc, c)))
            if block_c >= c:
                block_c = c
        else:
            block_c = c
    block_c = int(block_c)

    if block_n is None:
        bn = _TARGET_BLOCK_BYTES // max(1, block_c * itemsize)
        bn = int(max(8, min(_MAX_BLOCK_N, (bn // 8) * 8)))
        if bn >= n:
            if n >= 16:
                # Keep >= 2 row blocks so the "parallel" axis can use both v7x cores.
                bn = (((n + 1) // 2) + 7) // 8 * 8
            else:
                bn = n
        block_n = bn
    else:
        block_n = int(min(block_n, n))

    return int(block_n), block_c


def _vmem_limit(block_n, block_c, itemsize, tiled):
    logits_bufs = 2 * block_n * block_c * itemsize     # double-buffered input tiles
    f32_tmp = 2 * block_n * block_c * 4                # exp argument/result transients
    targets_bufs = 2 * block_n * 128 * 4               # (bn, 1) int32 pads to 128 lanes
    stats = (3 * block_n * 128 * 4) if tiled else 0    # online-LSE scratch (lane-padded)
    out_bufs = 2 * 8 * 128 * 4
    need = logits_bufs + f32_tmp + targets_bufs + stats + out_bufs + (2 << 20)
    # >= 32 MiB keeps the larger tiles fully double-buffered on v5e/v6e;
    # <= 56 MiB leaves headroom under v7x's 64 MiB physical VMEM.
    return int(min(56 << 20, max(32 << 20, need)))


def cross_entropy_loss(logits, targets, block_n=None, block_c=None):
    """logits: (N, C) float32/bfloat16, targets: (N,) integer class indices.

    Matches torch.nn.CrossEntropyLoss() defaults (reduction='mean') applied to
    (inputs, targets.long()). Returns a float32 scalar. If given, block_c must be a
    multiple of 128 (or equal to C).
    """
    n, c = logits.shape
    itemsize = jnp.dtype(logits.dtype).itemsize
    targets_i32 = targets.astype(jnp.int32).reshape(n, 1)

    block_n, block_c = _choose_blocks(n, c, itemsize, block_n, block_c)
    num_row_blocks = int(pl.cdiv(n, block_n))
    num_class_blocks = int(pl.cdiv(c, block_c))
    mask_rows = (n % block_n) != 0
    tiled = num_class_blocks > 1

    cost = pl.CostEstimate(
        flops=5 * n * c,
        transcendentals=n * c,
        bytes_accessed=n * c * itemsize + n * 4 * num_class_blocks
        + num_row_blocks * 8 * 128 * 4,
    )
    out_shape = jax.ShapeDtypeStruct((num_row_blocks, 8, 128), jnp.float32)

    if not tiled:
        kernel = functools.partial(_ce_kernel_single, n_rows=n, block_n=block_n,
                                   mask_rows=mask_rows)
        partials = pl.pallas_call(
            kernel,
            out_shape=out_shape,
            grid=(num_row_blocks,),
            in_specs=[
                pl.BlockSpec((block_n, c), lambda i: (i, 0)),    # logits tile
                pl.BlockSpec((block_n, 1), lambda i: (i, 0)),    # targets tile
            ],
            out_specs=pl.BlockSpec((1, 8, 128), lambda i: (i, 0, 0)),
            compiler_params=pltpu.CompilerParams(
                dimension_semantics=("parallel",),
                vmem_limit_bytes=_vmem_limit(block_n, c, itemsize, tiled=False),
            ),
            cost_estimate=cost,
        )(logits, targets_i32)
    else:
        kernel = functools.partial(
            _ce_kernel_tiled, n_rows=n, n_cols=c, block_n=block_n, block_c=block_c,
            mask_rows=mask_rows, mask_cols=(c % block_c) != 0)
        partials = pl.pallas_call(
            kernel,
            out_shape=out_shape,
            grid=(num_row_blocks, num_class_blocks),
            in_specs=[
                pl.BlockSpec((block_n, block_c), lambda i, j: (i, j)),
                pl.BlockSpec((block_n, 1), lambda i, j: (i, 0)),
            ],
            out_specs=pl.BlockSpec((1, 8, 128), lambda i, j: (i, 0, 0)),
            scratch_shapes=[pltpu.VMEM((block_n, 1), jnp.float32)] * 3,  # m, l, tgt
            compiler_params=pltpu.CompilerParams(
                dimension_semantics=("parallel", "arbitrary"),
                vmem_limit_bytes=_vmem_limit(block_n, block_c, itemsize, tiled=True),
            ),
            cost_estimate=cost,
        )(logits, targets_i32)

    # Tiny cross-block reduction + a single divide by the true N (mean).
    return jnp.sum(partials[:, 0, 0]) / jnp.float32(n)


def _reference_ce(logits, targets):
    logits = logits.astype(jnp.float32)
    logp = jax.nn.log_softmax(logits, axis=-1)
    nll = -jnp.take_along_axis(logp, targets.astype(jnp.int32)[:, None], axis=-1)
    return jnp.mean(nll)


if __name__ == "__main__":
    key = jax.random.PRNGKey(0)
    k1, k2, k3, k4 = jax.random.split(key, 4)

    # --- Test 1: f32, explicit small tile (multi-block grid + masked tail). ---
    N, C = 72, 128
    logits = jax.random.normal(k1, (N, C), dtype=jnp.float32)
    targets = jax.random.randint(k2, (N,), 0, C, dtype=jnp.int32)

    loss = cross_entropy_loss(logits, targets, block_n=16)
    jax.block_until_ready(loss)
    ref = _reference_ce(logits, targets)
    assert jnp.allclose(loss, ref, atol=1e-4, rtol=1e-4), (loss, ref)

    # --- Test 2: bf16, auto tiles (no wrapper upcast; 2 row blocks for megacore). ---
    logits_bf16 = logits.astype(jnp.bfloat16)
    loss_bf16 = cross_entropy_loss(logits_bf16, targets)
    jax.block_until_ready(loss_bf16)
    ref_bf16 = _reference_ce(logits_bf16, targets)
    assert jnp.allclose(loss_bf16, ref_bf16, atol=1e-4, rtol=1e-4), (loss_bf16, ref_bf16)

    # --- Test 3: forced class tiling (online LSE, masked rows AND classes). ---
    N2, C2 = 72, 320
    logits2 = jax.random.normal(k3, (N2, C2), dtype=jnp.float32)
    targets2 = jax.random.randint(k4, (N2,), 0, C2, dtype=jnp.int32)
    loss2 = cross_entropy_loss(logits2, targets2, block_n=16, block_c=128)
    jax.block_until_ready(loss2)
    ref2 = _reference_ce(logits2, targets2)
    assert jnp.allclose(loss2, ref2, atol=1e-4, rtol=1e-4), (loss2, ref2)

    print("KERNEL_OK")
</pallas_src>

<mosaic_0001>
module attributes {stable_mosaic.version = 11 : i64} {
  func.func @_ce_kernel_single(%arg0: i32, %arg1: memref<16x128xf32, #tpu.memory_space<vmem>>, %arg2: memref<16x1xi32, #tpu.memory_space<vmem>>, %arg3: memref<1x8x128xf32, #tpu.memory_space<vmem>>) attributes {dimension_semantics = [#tpu.dimension_semantics<parallel>], iteration_bounds = array<i64: 5>, scalar_prefetch = 0 : i64, scratch_operands = 0 : i64, tpu.core_type = #tpu.core_type<tc>, window_params = [{transform_indices = @transform_0, window_bounds = array<i64: 16, 128>}, {transform_indices = @transform_1, window_bounds = array<i64: 16, 1>}, {transform_indices = @transform_2, window_bounds = array<i64: 1, 8, 128>}]} {
    %c0 = arith.constant 0 : index
    %c0_0 = arith.constant 0 : index
    %0 = vector.load %arg1[%c0, %c0_0] : memref<16x128xf32, #tpu.memory_space<vmem>>, vector<16x128xf32>
    %c0_1 = arith.constant 0 : index
    %c0_2 = arith.constant 0 : index
    %1 = vector.load %arg2[%c0_1, %c0_2] : memref<16x1xi32, #tpu.memory_space<vmem>>, vector<16x1xi32>
    %cst = arith.constant dense<0xFF800000> : vector<16xf32>
    %2 = vector.multi_reduction <maximumf>, %0, %cst [1] : vector<16x128xf32> to vector<16xf32>
    %3 = vector.shape_cast %2 : vector<16xf32> to vector<16x1xf32>
    %4 = vector.broadcast %3 : vector<16x1xf32> to vector<16x128xf32>
    %5 = arith.subf %0, %4 : vector<16x128xf32>
    %6 = math.exp %5 : vector<16x128xf32>
    %cst_3 = arith.constant dense<0.000000e+00> : vector<16xf32>
    %7 = vector.multi_reduction <add>, %6, %cst_3 [1] : vector<16x128xf32> to vector<16xf32>
    %8 = vector.shape_cast %7 : vector<16xf32> to vector<16x1xf32>
    %9 = math.log %8 : vector<16x1xf32>
    %10 = arith.addf %9, %3 : vector<16x1xf32>
    %11 = tpu.iota {dimensions = array<i32: 1>} : vector<16x128xi32>
    %c0_i32 = arith.constant 0 : i32
    %12 = vector.broadcast %c0_i32 : i32 to vector<16x128xi32>
    %13 = arith.addi %12, %11 : vector<16x128xi32>
    %14 = vector.broadcast %1 : vector<16x1xi32> to vector<16x128xi32>
    %15 = arith.cmpi eq, %13, %14 : vector<16x128xi32>
    %cst_4 = arith.constant 0.000000e+00 : f32
    %16 = vector.broadcast %cst_4 : f32 to vector<16x128xf32>
    %17 = arith.select %15, %0, %16 : vector<16x128xi1>, vector<16x128xf32>
    %cst_5 = arith.constant dense<0.000000e+00> : vector<16xf32>
    %18 = vector.multi_reduction <add>, %17, %cst_5 [1] : vector<16x128xf32> to vector<16xf32>
    %19 = vector.shape_cast %18 : vector<16xf32> to vector<16x1xf32>
    %20 = arith.subf %10, %19 : vector<16x1xf32>
    %c16_i32 = arith.constant 16 : i32
    %21 = arith.muli %arg0, %c16_i32 : i32
    %22 = tpu.iota {dimensions = array<i32: 0>} : vector<16x1xi32>
    %23 = vector.broadcast %21 : i32 to vector<16x1xi32>
    %24 = arith.addi %23, %22 : vector<16x1xi32>
    %c72_i32 = arith.constant 72 : i32
    %25 = vector.broadcast %c72_i32 : i32 to vector<16x1xi32>
    %26 = arith.cmpi slt, %24, %25 : vector<16x1xi32>
    %cst_6 = arith.constant 0.000000e+00 : f32
    %27 = vector.broadcast %cst_6 : f32 to vector<16x1xf32>
    %28 = arith.select %26, %20, %27 : vector<16x1xi1>, vector<16x1xf32>
    %29 = vector.shape_cast %28 : vector<16x1xf32> to vector<1x16x1xf32>
    %cst_7 = arith.constant dense<0.000000e+00> : vector<1xf32>
    %30 = vector.multi_reduction <add>, %29, %cst_7 [1, 2] : vector<1x16x1xf32> to vector<1xf32>
    %31 = vector.shape_cast %30 : vector<1xf32> to vector<1x1x1xf32>
    %32 = vector.extract %31[0, 0, 0] : f32 from vector<1x1x1xf32>
    %33 = vector.broadcast %32 : f32 to vector<1x8x128xf32>
    %c0_8 = arith.constant 0 : index
    %c0_9 = arith.constant 0 : index
    %c0_10 = arith.constant 0 : index
    %34 = vector.load %arg3[%c0_8, %c0_9, %c0_10] : memref<1x8x128xf32, #tpu.memory_space<vmem>>, vector<1x8x128xf32>
    tpu.vector_store %arg3[%c0_8, %c0_9, %c0_10], %33 {strides = array<i32>} : memref<1x8x128xf32, #tpu.memory_space<vmem>>, vector<1x8x128xf32>,
    return
  }
  func.func @transform_0(%arg0: i32) -> (i32, i32) {
    %c0_i32 = arith.constant 0 : i32
    %c0_i32_0 = arith.constant 0 : i32
    return %arg0, %c0_i32 : i32, i32
  }
  func.func @transform_1(%arg0: i32) -> (i32, i32) {
    %c0_i32 = arith.constant 0 : i32
    %c0_i32_0 = arith.constant 0 : i32
    return %arg0, %c0_i32 : i32, i32
  }
  func.func @transform_2(%arg0: i32) -> (i32, i32, i32) {
    %c0_i32 = arith.constant 0 : i32
    %c0_i32_0 = arith.constant 0 : i32
    %c0_i32_1 = arith.constant 0 : i32
    return %arg0, %c0_i32, %c0_i32_0 : i32, i32, i32
  }
}

</mosaic_0001>

<bundles_post_ra>
// kernel: tpu_custom_call.1
= control target key start
LH: loop header
LB: loop body
LE: loop exit
PB: predicated region body
PF: predicated region fallthrough
CT: control target
= control target key end

     0   :  { %7 = vsyncpa [#allocation3], 0  ;;  %s609_s0 = inlined_call_operand.vmem [shape: f32[72,128], index: 0, kind: input, shape index: {}]   ;;  %s610_s1 = inlined_call_operand.vmem [shape: s32[72,1], index: 1, kind: input, shape index: {}]   ;;  %s611_s2 = inlined_call_operand.hbm [shape: f32[5,8,128], index: 2, kind: output, shape index: {}]  }
   0x1   :  { %9 = vsyncpa [#allocation3 + $0x1], 0  ;;  %s506_s9 = smov 0   ;;  %s508_s10 = smov 0  }
   0x2   :  { %s510_s11 = smov 0   ;;  %s512_s12 = smov 0  }
   0x3 LB: > { %s527_s13 = sadd.s32 4294967295, %s487_s12   ;;  %s359_s14 = sadd.s32 4294967294, %s487_s12   ;;  %s487_s12 = sphi %s512_s12, %s617_s12   ;;  %s483_s11 = sphi %s510_s11, %s616_s11   ;;  %s479_s10 = sphi %s508_s10, %s615_s10   ;;  %s475_s9 = sphi %s506_s9, %s614_s9  }
   0x4   : > { %s531_s15 = sadd.s32 1, %s487_s12   ;;  %s74_s16 = sadd.s32 1, %s483_s11 }
   0x5   : > { %s71_s17 = ssub.s32 %s487_s12, %s531_s15  ;;  %p84_p0 = scmp.ne.s32.totalorder %s483_s11, %s479_s10 }
   0x6   : > { %p72_p1 = scmp.eq.s32.totalorder %s71_s17, 0  ;;  %p85_p2 = scmp.eq.s32.totalorder %s527_s13, 4 }
   0x7   : > { %p90_p3 = scmp.ne.s32.totalorder %s479_s10, %s475_s9  ;;  %p91_p4 = scmp.eq.s32.totalorder %s359_s14, 4 }
   0x8   : > { %s542_s18 = scalar_select %p72_p1, %s483_s11, %s74_s16  }
   0x9   : > { %p544_p5 = por %p85_p2, %p84_p0  ;;  %p548_p6 = por %p91_p4, %p90_p3 }
   0xa   : > { %p362_p7 = scmp.ge.s32.totalorder %s487_s12, 1  ;;  %p143_p8 = scmp.lt.s32.totalorder %s487_s12, 6 }
   0xc   : > { %p144_p9 = pnand %p362_p7, %p143_p8 }
   0xd   : > { %s364_s21 = sshll.u32 (!%p144_p9), %s527_s13, 1  ;;  %v489_v0 = vmov (!%p144_p9), 0   ;;  %v230_v10 = vlaneseq (!%p144_p9)  ;;  %s368_s29 = sshll.u32 (!%p144_p9), %s527_s13, 4  ;;  %vm259_vm4 = vcmask (!%p144_p9), 7168  }
   0xe   : > { %147 = sbr.rel (%p144_p9) target bundleno = 568 (0x238), region = 28  ;;  %p183_p10 = scmp.lt.s32.totalorder (!%p144_p9), %s364_s21, 8  ;;  %415 = vset.pattern.permute.xlu1 (!%p144_p9), %v489_v0  ;;  %416 = vset.pattern.permute.xlu0 (!%p144_p9), %v489_v0  ;;  %v252_v22 = vstv (!%p144_p9), %s368_s29 }
   0xf   : > { %v231_v13 = vand.u32 (!%p144_p9), 127, %v230_v10  ;;  %v250_v21 = vshrl.u32 (!%p144_p9), %v230_v10, 7  ;;  %s175_s30 = sand.u32 (!%p144_p9), 1, %s479_s10   ;;  %s370_s6 = sshll.u32 (!%p144_p9), %s527_s13, 7 }
  0x10   : > { %s363_s3 = sshll.u32 (!%p144_p9), %s175_s30, 3  ;;  %s569_s16 = scalar_lea.hbm (!%p144_p9), %s611_s2, %s370_s6 }
  0x11   : > { %v251_v24 = vadd.s32 (!%p144_p9), 8, %v250_v21  ;;  %v253_v26 = vadd.s32 (!%p144_p9), %v252_v22, %v250_v21  ;;  %s177_s4 = scalar_lea.vmem (!%p144_p9), [#allocation2], %s363_s3  ;;  %s275_s17 = scalar_lea.sflag (!%p144_p9), [#allocation3], %s175_s30 }
  0x12   : > { %s288_s5 = sshll.u32 (!%p144_p9), %s177_s4, 4  ;;  %s490_s13 = smov (!%p144_p9), [#allocation2]   ;;  %s564_s5 = int_to_ptr.vmem [resolvable:$true] %s288_s5 }
  0x13   : > { %v254_v30 = vadd.s32 (!%p144_p9), %v252_v22, %v251_v24  ;;  %vm255_vm2 = vcmp.lt.s32.totalorder (!%p144_p9), %v253_v26, 72 }
  0x15   : > { %s619_s21 = smov (!%p183_p10, %s364_s21), 8  ;;  %vm256_vm3 = vcmp.lt.s32.totalorder %v254_v30, 72 }
  0x16   : > { %s365_s22 = sshll.u32 %s619_s21, 3  ;;  %s425_s21 = scalar_lea.vmem %s564_s5, 128 }
  0x17   : > { %s186_s25 = scalar_lea.vmem %s609_s0, %s365_s22  ;;  %s200_s28 = scalar_lea.vmem %s610_s1, %s365_s22 }
  0x18   : > { %v206_v1 = vld [vmem:[%s186_s25] sm:$0xff]  ;;  %v207_v3 = vld [vmem:[%s186_s25 + $0x8] sm:$0xff]  ;;  %p426_p11 = scmp.ne.s32.totalorder %s564_s5, %s425_s21  ;;  %s429_s22 = sshll.u32 %s490_s13, 4  ;;  %s430_s22 = int_to_ptr.vmem [resolvable:$false] %s429_s22 }
  0x19   : > { %v208_v2 = vld [vmem:[%s200_s28] sm:$0xff]  ;;  %210 = vmax.xlane.f32.xlu0 %v206_v1  ;;  %v209_v4 = vld [vmem:[%s200_s28 + $0x8] sm:$0xff]  ;;  %s431_s23 = scalar_lea.vmem %s430_s22, 256  ;;  %p432_p0 = scmp.lt.s32.totalorder %s564_s5, %s430_s22 }
  0x1a   : > { %233 = vperm.xlu1 %415, %v208_v2   ;;  %p427_p12 = pnand %p426_p11, %p544_p5  ;;  %p433_p1 = scmp.lt.s32.totalorder %s431_s23, %s425_s21 }
  0x1c   : > { %p428_p13 = pneg %p427_p12  ;;  %p434_p2 = por %p433_p1, %p432_p0 }
  0x1d   : > { %212 = vmax.xlane.f32.xlu0 %v207_v3 }
  0x1e   : > { %236 = vperm.xlu1 %415, %v209_v4   ;;  %p435_p3 = pnand %p434_p2, %p428_p13 }
  0x99   : > { %v234_v12 = vpop.permute.xlu1 %233 }
  0x9a   : > { %vm238_vm0 = vcmp.eq.s32.totalorder %v231_v13, %v234_v12 }
  0x9b   : > { %v240_v16 = vsel %vm238_vm0, %v206_v1, 0.0 }
  0x9d   : > { %v237_v15 = vpop.permute.xlu1 %236 }
  0x9e   : > { %vm239_vm1 = vcmp.eq.s32.totalorder %v231_v13, %v237_v15 }
  0x9f   : > { %v241_v18 = vsel %vm239_vm1, %v207_v3, 0.0 }
  0xa6   : > { %v211_v5 = vpop.xlane.xlu0 %210 }
  0xa7   : > { %v214_v6 = vsub.f32 %v206_v1, %v211_v5 }
  0xa9   : > { %v216_v7 = vmul.f32 1.442695, %v214_v6 }
  0xaa   : > { %v213_v8 = vpop.xlane.xlu0 %212 }
  0xab   : > { %417 = vpow2.f32 %v216_v7  ;;  %v215_v9 = vsub.f32 %v207_v3, %v213_v8 }
  0xad   : > { %v218_v11 = vmul.f32 1.442695, %v215_v9 }
  0xaf   : > { %419 = vpow2.f32 %v218_v11 }
  0xb5   : > { %v418_v14 = vpop.eup %417 }
  0xb6   : > { %220 = vadd.xlane.f32.xlu0 %v418_v14 }
  0xb9   : > { %v420_v17 = vpop.eup %419 }
  0xba   : > { %222 = vadd.xlane.f32.xlu1 %v420_v17  ;;  %242 = vadd.xlane.f32.xlu0 %v240_v16 }
  0xbe   : > { %244 = vadd.xlane.f32.xlu0 %v241_v18 }
 0x143   : > { %v221_v19 = vpop.xlane.xlu0 %220 }
 0x144   : > { %421 = vlog2.f32 %v221_v19 }
 0x147   : > { %v223_v20 = vpop.xlane.xlu1 %222  ;;  %v243_v27 = vpop.xlane.xlu0 %242 }
 0x148   : > { %423 = vlog2.f32 %v223_v20 }
 0x14b   : > { %v245_v34 = vpop.xlane.xlu0 %244 }
 0x14e   : > { %v422_v23 = vpop.eup %421 }
 0x14f   : > { %v225_v25 = vmul.f32 0.6931472, %v422_v23 }
 0x151   : > { %v228_v28 = vadd.f32 %v225_v25, %v211_v5 }
 0x152   : > { %v424_v29 = vpop.eup %423 }
 0x153   : > { %v227_v31 = vmul.f32 0.6931472, %v424_v29  ;;  %v246_v32 = vsub.f32 %v228_v28, %v243_v27 }
 0x155   : > { %v229_v33 = vadd.f32 %v227_v31, %v213_v8  ;;  %v257_v35 = vsel %vm255_vm2, %v246_v32, 0.0 }
 0x156   : > { %v260_v38 = vsel %vm259_vm4, %v257_v35, 0.0 }
 0x157   : > { %v247_v36 = vsub.f32 %v229_v33, %v245_v34 }
 0x159   : > { %v258_v37 = vsel %vm256_vm3, %v247_v36, 0.0 }
 0x15a   : > { %v261_v39 = vsel %vm259_vm4, %v258_v37, 0.0 }
 0x15b   : > { %v262_v40 = vadd.f32 %v261_v39, %v260_v38 }
 0x15d   : > { %263 = vadd.xlane.f32.xlu0 %v262_v40 }
 0x1ea   : > { %v264_v41 = vpop.xlane.xlu0 %263 }
 0x1eb   : > { %v265_v42 = vrot.slane %v264_v41, 4 }
 0x1ed   : > { %v266_v43 = vadd.f32 %v265_v42, %v264_v41 }
 0x1ef   : > { %v267_v44 = vrot.slane %v266_v43, 2 }
 0x1f1   : > { %v268_v45 = vadd.f32 %v267_v44, %v266_v43 }
 0x1f3   : > { %v269_v46 = vrot.slane %v268_v45, 1 }
 0x1f5   : > { %v270_v47 = vadd.f32 %v269_v46, %v268_v45 }
 0x1f7   : > { %373 = vpush %v270_v47 }
 0x228   : > { %s374_s7 = spop %373 }
 0x229   : > { %v272_v48 = vstv %s374_s7 }
 0x22a   : > { %273 = vst [vmem:[%s177_s4] sm:$0xff] %v272_v48 }
 0x22b   : > { %438 = shalt.err (!%p435_p3)
}
 0x22c   : > { %s439_s24 = scalar_lea.hbm %s569_s16, 128  ;;  %s443_s27 = scalar_lea.hbm %s611_s2, 640 }
 0x22d   : > { %p440_p4 = scmp.ne.s32.totalorder %s569_s16, %s439_s24  ;;  %p444_p9 = scmp.lt.u32.totalorder %s569_s16, %s611_s2 }
 0x22e   : > { %p445_p10 = scmp.lt.u32.totalorder %s443_s27, %s439_s24  ;;  %p447_p12 = scmp.lt.u32.totalorder %s439_s24, %s569_s16 }
 0x22f   : > { %p441_p7 = pnand %p440_p4, %p544_p5 }
 0x230   : > { %p446_p11 = por %p445_p10, %p444_p9 }
 0x231   : > { %p442_p8 = pneg %p441_p7 }
 0x232   : > { %p448_p13 = por %p447_p12, %p446_p11 }
 0x234   : > { %p449_p0 = pnand %p448_p13, %p442_p8 }
 0x236   : > { %452 = shalt.err (!%p449_p0)
}
 0x237   : > { %375 = dma.vmem_to_hbm [thread:$0]  (%p544_p5), %s564_s5, 128, %s569_s16, %s275_s17  }
 0x238 PF: > { %p381_p1 = scmp.ge.s32.totalorder %s487_s12, 2  ;;  %s300_s30 = sand.u32 1, %s475_s9  }
 0x239   : > { %s301_s3 = scalar_lea.sflag [#allocation3], %s300_s30 }
 0x23a   : > { %p378_p2 = pnand %p381_p1, %p548_p6 }
 0x23c   : > { %470 = dma.done.wait (!%p378_p2), %s301_s3, 128  }
 0x23d   : > { %472 = vsyncadd (!%p378_p2), %s301_s3, 4294967168  ;;  %p12_p3 = scmp.ge.s32.totalorder %s531_s15, 7   ;;  %s614_s9 = smov %s479_s10 }
 0x23e   : > { %s615_s10 = smov %s483_s11  ;;  %s616_s11 = smov %s542_s18 }
 0x23f   : > { %s617_s12 = smov %s531_s15  ;;  %14 = sbr.rel (!%p12_p3) target bundleno = 3 (0x3), region = 66 }
 0x246   :  { %306 = vsyncpa [#allocation3], 1 }
 0x247   :  { %308 = vsyncpa [#allocation3 + $0x1], 1 }

</bundles_post_ra>
